<compile_context>
chip_gen: v7x
topology: tpu7x:2x2x1
jax: 0.10.0
libtpu: 0.0.40
codegen_flags: <defaults>
</compile_context>

<pallas_src>
import numpy as np
import jax
import jax.numpy as jnp
from jax import lax
from jax.experimental import pallas as pl
from jax.experimental.pallas import tpu as pltpu


def _round_up(x, m):
    return (x + m - 1) // m * m


def _vmem_budget_bytes():
    """Generation-aware VMEM budget (3/4 of physical), conservative fallback."""
    cap = None
    try:
        info = pltpu.get_tpu_info()
        cap = getattr(info, "vmem_capacity_bytes", None)
    except Exception:
        cap = None
    if not cap:
        cap = 64 * 1024 * 1024  # conservative: v7x per-core VMEM
    return (int(cap) * 3) // 4


def _choose_tiles(B, Ci, Co, M_P, budget):
    """Pick (B_T, CO_T) so the double-buffered per-step footprint fits the budget."""
    B_T = min(_round_up(B, 8), 32)
    CO_T = min(_round_up(Co, 8), 128)

    def fp(bt, ct):
        a = 2 * Ci * bt * M_P * 4
        w = 2 * Ci * ct * M_P * 4
        o = 2 * bt * ct * M_P * 4
        return 2 * (a + w + o)  # double-buffered input/output blocks

    while fp(B_T, CO_T) > budget and (B_T > 8 or CO_T > 8):
        if CO_T >= B_T and CO_T > 8:
            CO_T = _round_up(CO_T // 2, 8)
        elif B_T > 8:
            B_T = _round_up(B_T // 2, 8)
        else:
            break
    return B_T, CO_T, fp(B_T, CO_T)


def _make_spectral_kernel(ci, b_t, co_t, m_p, b_sub, co_sub, m_sub,
                          full_unroll, partial_unroll):
    """Kernel for one (cout-tile, batch-tile) grid step.

    a_ref: (2, Ci, B_T, M_P)   re/im activations (Cin leading for cheap indexing)
    w_ref: (2, Ci, CO_T, M_P)  re/im weights
    o_ref: (2, B_T, CO_T, M_P) re/im output — each sub-tile written exactly once
    """
    nb = b_t // b_sub
    nc = co_t // co_sub
    nm = m_p // m_sub

    def kernel(a_ref, w_ref, o_ref):
        # Static sub-tile loops: each sub-tile's accumulator stays vreg-resident
        # across the whole Cin contraction (no output-block load/store per Ci step).
        for bi in range(nb):
            b0 = bi * b_sub
            for cj in range(nc):
                c0 = cj * co_sub
                for mk in range(nm):
                    m0 = mk * m_sub

                    def load(i):
                        a_r = a_ref[0, i, b0:b0 + b_sub, m0:m0 + m_sub][:, None, :]
                        a_i = a_ref[1, i, b0:b0 + b_sub, m0:m0 + m_sub][:, None, :]
                        w_r = w_ref[0, i, c0:c0 + co_sub, m0:m0 + m_sub][None, :, :]
                        w_i = w_ref[1, i, c0:c0 + co_sub, m0:m0 + m_sub][None, :, :]
                        return a_r, a_i, w_r, w_i

                    # Peeled first input channel: no zero-init + first add.
                    a_r, a_i, w_r, w_i = load(0)
                    acc_r = a_r * w_r - a_i * w_i
                    acc_i = a_r * w_i + a_i * w_r

                    def mac(i, carry):
                        cr, cim = carry
                        ar, ai, wr, wi = load(i)
                        return (cr + (ar * wr - ai * wi),
                                cim + (ar * wi + ai * wr))

                    if ci > 1:
                        if full_unroll:
                            for i in range(1, ci):
                                acc_r, acc_i = mac(i, (acc_r, acc_i))
                        else:
                            acc_r, acc_i = lax.fori_loop(
                                1, ci, mac, (acc_r, acc_i), unroll=partial_unroll)

                    # Single store per output sub-tile (register-resident accumulation).
                    o_ref[0, b0:b0 + b_sub, c0:c0 + co_sub, m0:m0 + m_sub] = acc_r
                    o_ref[1, b0:b0 + b_sub, c0:c0 + co_sub, m0:m0 + m_sub] = acc_i

    return kernel


def _compl_mul2d_pallas(a, w):
    """a: (B, Ci, 2*m1, m2) complex64 — both spectral corners folded along axis 2.
       w: (Ci, Co, 2*m1, m2) complex64.
       returns (B, Co, 2*m1, m2) complex64 computed by the Pallas kernel."""
    B, Ci, mm1, m2 = a.shape
    Co = w.shape[1]
    M2 = mm1 * m2
    M_P = _round_up(M2, 128)          # lane-dense mode axis (both corners folded)

    budget = _vmem_budget_bytes()
    B_T, CO_T, _ = _choose_tiles(B, Ci, Co, M_P, budget)
    B_P = _round_up(B, B_T)
    CO_P = _round_up(Co, CO_T)

    # Re/im planes, Cin leading, zero-padded (padded rows/lanes contribute nothing
    # and are sliced off after the kernel).  These are mode-truncated arrays, so
    # the wrapper-side reshuffle is small compared to the FFT-sized tensors.
    a_ri = jnp.stack([jnp.real(a), jnp.imag(a)], axis=0)        # (2, B, Ci, mm1, m2)
    a_ri = a_ri.reshape(2, B, Ci, M2).transpose(0, 2, 1, 3)     # (2, Ci, B, M2)
    a_ri = jnp.pad(a_ri.astype(jnp.float32),
                   ((0, 0), (0, 0), (0, B_P - B), (0, M_P - M2)))

    w_ri = jnp.stack([jnp.real(w), jnp.imag(w)], axis=0)        # (2, Ci, Co, mm1, m2)
    w_ri = w_ri.reshape(2, Ci, Co, M2)
    w_ri = jnp.pad(w_ri.astype(jnp.float32),
                   ((0, 0), (0, 0), (0, CO_P - Co), (0, M_P - M2)))

    # Pick grid ordering so the re-fetched operand generates the least HBM traffic.
    n_b = B_P // B_T
    n_co = CO_P // CO_T
    a_bytes = 2 * Ci * B_P * M_P * 4
    w_bytes = 2 * Ci * CO_P * M_P * 4
    traffic_b_inner = a_bytes * n_co + w_bytes     # weights resident across batch loop
    traffic_co_inner = w_bytes * n_b + a_bytes     # activations resident across cout loop
    if traffic_b_inner <= traffic_co_inner:
        grid = (n_co, n_b)
        a_map = lambda co, b: (0, 0, b, 0)
        w_map = lambda co, b: (0, 0, co, 0)
        o_map = lambda co, b: (0, b, co, 0)
    else:
        grid = (n_b, n_co)
        a_map = lambda b, co: (0, 0, b, 0)
        w_map = lambda b, co: (0, 0, co, 0)
        o_map = lambda b, co: (0, b, co, 0)

    # Register-resident accumulator sub-tiles (~16 vregs per sub-tile).
    B_SUB = min(B_T, 8)
    CO_SUB = min(CO_T, 8)
    M_SUB = min(M_P, 128)
    full_unroll = Ci <= 16
    partial_unroll = 1 if full_unroll else 8

    kernel = _make_spectral_kernel(Ci, B_T, CO_T, M_P, B_SUB, CO_SUB, M_SUB,
                                   full_unroll, partial_unroll)

    out = pl.pallas_call(
        kernel,
        out_shape=jax.ShapeDtypeStruct((2, B_P, CO_P, M_P), jnp.float32),
        grid=grid,
        in_specs=[
            pl.BlockSpec((2, Ci, B_T, M_P), a_map),
            pl.BlockSpec((2, Ci, CO_T, M_P), w_map),
        ],
        out_specs=pl.BlockSpec((2, B_T, CO_T, M_P), o_map),
        compiler_params=pltpu.CompilerParams(
            # every grid step writes a distinct output block
            dimension_semantics=("parallel", "parallel"),
            vmem_limit_bytes=int(budget),
        ),
    )(a_ri, w_ri)

    out = out[:, :B, :Co, :M2]
    out_c = lax.complex(out[0], out[1])                          # (B, Co, M2)
    return out_c.reshape(B, Co, mm1, m2)


def spectral_conv2d_new(x, weights1, weights2, modes1, modes2):
    """Forward pass of SpectralConv2d_new.
    x: (B, Cin, H, W) float32 (NCHW, same as PyTorch).
    weights1/2: (Cin, Cout, modes1, modes2) complex64.
    returns (B, Cout, H, W) float32."""
    B, Ci, H, W = x.shape
    Co = weights1.shape[1]
    Wh = W // 2 + 1

    # TODO(synk): rfft2 / irfft2 have no Pallas TPU equivalent; they stay in XLA.
    x_ft = jnp.fft.rfft2(x, norm="ortho")                        # (B, Ci, H, Wh) complex64

    # Fold the two retained spectral corners into a single mode axis.
    a = jnp.concatenate([x_ft[:, :, :modes1, :modes2],
                         x_ft[:, :, H - modes1:, :modes2]], axis=2)   # (B, Ci, 2*m1, m2)
    w = jnp.concatenate([weights1, weights2], axis=2)                  # (Ci, Co, 2*m1, m2)

    out_modes = _compl_mul2d_pallas(a, w)                              # (B, Co, 2*m1, m2)

    out_ft = jnp.zeros((B, Co, H, Wh), dtype=jnp.complex64)
    out_ft = out_ft.at[:, :, :modes1, :modes2].set(out_modes[:, :, :modes1])
    out_ft = out_ft.at[:, :, H - modes1:, :modes2].set(out_modes[:, :, modes1:])

    return jnp.fft.irfft2(out_ft, s=(H, W), norm="ortho")             # (B, Co, H, W) float32


def _reference(x, weights1, weights2, modes1, modes2):
    # pure-JAX reference mirroring the torch forward
    B, Ci, H, W = x.shape
    Co = weights1.shape[1]
    x_ft = jnp.fft.rfft2(x, norm="ortho")
    out_ft = jnp.zeros((B, Co, H, W // 2 + 1), dtype=jnp.complex64)
    mul = lambda a, b: jnp.einsum("bixy,ioxy->boxy", a, b)
    out_ft = out_ft.at[:, :, :modes1, :modes2].set(
        mul(x_ft[:, :, :modes1, :modes2], weights1))
    out_ft = out_ft.at[:, :, H - modes1:, :modes2].set(
        mul(x_ft[:, :, H - modes1:, :modes2], weights2))
    return jnp.fft.irfft2(out_ft, s=(H, W), norm="ortho")


if __name__ == "__main__":
    key = jax.random.PRNGKey(0)
    B, Cin, Cout, H, W = 2, 4, 4, 16, 16
    modes1, modes2 = 4, 4
    scale = 1.0 / (Cin * Cout)

    k_x, k_w1r, k_w1i, k_w2r, k_w2i = jax.random.split(key, 5)
    x = jax.random.normal(k_x, (B, Cin, H, W), dtype=jnp.float32)

    # torch.rand(dtype=cfloat): real and imag parts each uniform in [0, 1)
    weights1 = (scale * (jax.random.uniform(k_w1r, (Cin, Cout, modes1, modes2))
                         + 1j * jax.random.uniform(k_w1i, (Cin, Cout, modes1, modes2)))
                ).astype(jnp.complex64)
    weights2 = (scale * (jax.random.uniform(k_w2r, (Cin, Cout, modes1, modes2))
                         + 1j * jax.random.uniform(k_w2i, (Cin, Cout, modes1, modes2)))
                ).astype(jnp.complex64)

    fwd = jax.jit(spectral_conv2d_new, static_argnums=(3, 4))
    out = fwd(x, weights1, weights2, modes1, modes2)
    out = jax.block_until_ready(out)

    ref = jax.block_until_ready(_reference(x, weights1, weights2, modes1, modes2))
    assert out.shape == (B, Cout, H, W)
    assert np.allclose(np.asarray(out), np.asarray(ref), atol=1e-5, rtol=1e-5)

    print("KERNEL_OK")
</pallas_src>

<mosaic_0001>
module attributes {stable_mosaic.version = 11 : i64} {
  func.func @kernel(%arg0: i32, %arg1: i32, %arg2: memref<2x4x8x128xf32, #tpu.memory_space<vmem>>, %arg3: memref<2x4x8x128xf32, #tpu.memory_space<vmem>>, %arg4: memref<2x8x8x128xf32, #tpu.memory_space<vmem>>) attributes {dimension_semantics = [#tpu.dimension_semantics<parallel>, #tpu.dimension_semantics<parallel>], iteration_bounds = array<i64: 1, 1>, scalar_prefetch = 0 : i64, scratch_operands = 0 : i64, tpu.core_type = #tpu.core_type<tc>, window_params = [{transform_indices = @transform_0, window_bounds = array<i64: 2, 4, 8, 128>}, {transform_indices = @transform_1, window_bounds = array<i64: 2, 4, 8, 128>}, {transform_indices = @transform_2, window_bounds = array<i64: 2, 8, 8, 128>}]} {
    %c0 = arith.constant 0 : index
    %c0_0 = arith.constant 0 : index
    %c0_1 = arith.constant 0 : index
    %c0_2 = arith.constant 0 : index
    %0 = vector.load %arg2[%c0, %c0_0, %c0_1, %c0_2] : memref<2x4x8x128xf32, #tpu.memory_space<vmem>>, vector<1x1x8x128xf32>
    %1 = vector.shape_cast %0 : vector<1x1x8x128xf32> to vector<8x128xf32>
    %2 = vector.shape_cast %1 : vector<8x128xf32> to vector<8x1x128xf32>
    %c1 = arith.constant 1 : index
    %c0_3 = arith.constant 0 : index
    %c0_4 = arith.constant 0 : index
    %c0_5 = arith.constant 0 : index
    %3 = vector.load %arg2[%c1, %c0_3, %c0_4, %c0_5] : memref<2x4x8x128xf32, #tpu.memory_space<vmem>>, vector<1x1x8x128xf32>
    %4 = vector.shape_cast %3 : vector<1x1x8x128xf32> to vector<8x128xf32>
    %5 = vector.shape_cast %4 : vector<8x128xf32> to vector<8x1x128xf32>
    %c0_6 = arith.constant 0 : index
    %c0_7 = arith.constant 0 : index
    %c0_8 = arith.constant 0 : index
    %c0_9 = arith.constant 0 : index
    %6 = vector.load %arg3[%c0_6, %c0_7, %c0_8, %c0_9] : memref<2x4x8x128xf32, #tpu.memory_space<vmem>>, vector<1x1x8x128xf32>
    %7 = vector.shape_cast %6 : vector<1x1x8x128xf32> to vector<8x128xf32>
    %8 = vector.shape_cast %7 : vector<8x128xf32> to vector<1x8x128xf32>
    %c1_10 = arith.constant 1 : index
    %c0_11 = arith.constant 0 : index
    %c0_12 = arith.constant 0 : index
    %c0_13 = arith.constant 0 : index
    %9 = vector.load %arg3[%c1_10, %c0_11, %c0_12, %c0_13] : memref<2x4x8x128xf32, #tpu.memory_space<vmem>>, vector<1x1x8x128xf32>
    %10 = vector.shape_cast %9 : vector<1x1x8x128xf32> to vector<8x128xf32>
    %11 = vector.shape_cast %10 : vector<8x128xf32> to vector<1x8x128xf32>
    %12 = vector.broadcast %2 : vector<8x1x128xf32> to vector<8x8x128xf32>
    %13 = vector.broadcast %8 : vector<1x8x128xf32> to vector<8x8x128xf32>
    %14 = arith.mulf %12, %13 : vector<8x8x128xf32>
    %15 = vector.broadcast %5 : vector<8x1x128xf32> to vector<8x8x128xf32>
    %16 = vector.broadcast %11 : vector<1x8x128xf32> to vector<8x8x128xf32>
    %17 = arith.mulf %15, %16 : vector<8x8x128xf32>
    %18 = arith.subf %14, %17 : vector<8x8x128xf32>
    %19 = vector.broadcast %2 : vector<8x1x128xf32> to vector<8x8x128xf32>
    %20 = vector.broadcast %11 : vector<1x8x128xf32> to vector<8x8x128xf32>
    %21 = arith.mulf %19, %20 : vector<8x8x128xf32>
    %22 = vector.broadcast %5 : vector<8x1x128xf32> to vector<8x8x128xf32>
    %23 = vector.broadcast %8 : vector<1x8x128xf32> to vector<8x8x128xf32>
    %24 = arith.mulf %22, %23 : vector<8x8x128xf32>
    %25 = arith.addf %21, %24 : vector<8x8x128xf32>
    %c0_14 = arith.constant 0 : index
    %c1_15 = arith.constant 1 : index
    %c0_16 = arith.constant 0 : index
    %c0_17 = arith.constant 0 : index
    %26 = vector.load %arg2[%c0_14, %c1_15, %c0_16, %c0_17] : memref<2x4x8x128xf32, #tpu.memory_space<vmem>>, vector<1x1x8x128xf32>
    %27 = vector.shape_cast %26 : vector<1x1x8x128xf32> to vector<8x128xf32>
    %28 = vector.shape_cast %27 : vector<8x128xf32> to vector<8x1x128xf32>
    %c1_18 = arith.constant 1 : index
    %c1_19 = arith.constant 1 : index
    %c0_20 = arith.constant 0 : index
    %c0_21 = arith.constant 0 : index
    %29 = vector.load %arg2[%c1_18, %c1_19, %c0_20, %c0_21] : memref<2x4x8x128xf32, #tpu.memory_space<vmem>>, vector<1x1x8x128xf32>
    %30 = vector.shape_cast %29 : vector<1x1x8x128xf32> to vector<8x128xf32>
    %31 = vector.shape_cast %30 : vector<8x128xf32> to vector<8x1x128xf32>
    %c0_22 = arith.constant 0 : index
    %c1_23 = arith.constant 1 : index
    %c0_24 = arith.constant 0 : index
    %c0_25 = arith.constant 0 : index
    %32 = vector.load %arg3[%c0_22, %c1_23, %c0_24, %c0_25] : memref<2x4x8x128xf32, #tpu.memory_space<vmem>>, vector<1x1x8x128xf32>
    %33 = vector.shape_cast %32 : vector<1x1x8x128xf32> to vector<8x128xf32>
    %34 = vector.shape_cast %33 : vector<8x128xf32> to vector<1x8x128xf32>
    %c1_26 = arith.constant 1 : index
    %c1_27 = arith.constant 1 : index
    %c0_28 = arith.constant 0 : index
    %c0_29 = arith.constant 0 : index
    %35 = vector.load %arg3[%c1_26, %c1_27, %c0_28, %c0_29] : memref<2x4x8x128xf32, #tpu.memory_space<vmem>>, vector<1x1x8x128xf32>
    %36 = vector.shape_cast %35 : vector<1x1x8x128xf32> to vector<8x128xf32>
    %37 = vector.shape_cast %36 : vector<8x128xf32> to vector<1x8x128xf32>
    %38 = vector.broadcast %28 : vector<8x1x128xf32> to vector<8x8x128xf32>
    %39 = vector.broadcast %34 : vector<1x8x128xf32> to vector<8x8x128xf32>
    %40 = arith.mulf %38, %39 : vector<8x8x128xf32>
    %41 = vector.broadcast %31 : vector<8x1x128xf32> to vector<8x8x128xf32>
    %42 = vector.broadcast %37 : vector<1x8x128xf32> to vector<8x8x128xf32>
    %43 = arith.mulf %41, %42 : vector<8x8x128xf32>
    %44 = arith.subf %40, %43 : vector<8x8x128xf32>
    %45 = arith.addf %18, %44 : vector<8x8x128xf32>
    %46 = vector.broadcast %28 : vector<8x1x128xf32> to vector<8x8x128xf32>
    %47 = vector.broadcast %37 : vector<1x8x128xf32> to vector<8x8x128xf32>
    %48 = arith.mulf %46, %47 : vector<8x8x128xf32>
    %49 = vector.broadcast %31 : vector<8x1x128xf32> to vector<8x8x128xf32>
    %50 = vector.broadcast %34 : vector<1x8x128xf32> to vector<8x8x128xf32>
    %51 = arith.mulf %49, %50 : vector<8x8x128xf32>
    %52 = arith.addf %48, %51 : vector<8x8x128xf32>
    %53 = arith.addf %25, %52 : vector<8x8x128xf32>
    %c0_30 = arith.constant 0 : index
    %c2 = arith.constant 2 : index
    %c0_31 = arith.constant 0 : index
    %c0_32 = arith.constant 0 : index
    %54 = vector.load %arg2[%c0_30, %c2, %c0_31, %c0_32] : memref<2x4x8x128xf32, #tpu.memory_space<vmem>>, vector<1x1x8x128xf32>
    %55 = vector.shape_cast %54 : vector<1x1x8x128xf32> to vector<8x128xf32>
    %56 = vector.shape_cast %55 : vector<8x128xf32> to vector<8x1x128xf32>
    %c1_33 = arith.constant 1 : index
    %c2_34 = arith.constant 2 : index
    %c0_35 = arith.constant 0 : index
    %c0_36 = arith.constant 0 : index
    %57 = vector.load %arg2[%c1_33, %c2_34, %c0_35, %c0_36] : memref<2x4x8x128xf32, #tpu.memory_space<vmem>>, vector<1x1x8x128xf32>
    %58 = vector.shape_cast %57 : vector<1x1x8x128xf32> to vector<8x128xf32>
    %59 = vector.shape_cast %58 : vector<8x128xf32> to vector<8x1x128xf32>
    %c0_37 = arith.constant 0 : index
    %c2_38 = arith.constant 2 : index
    %c0_39 = arith.constant 0 : index
    %c0_40 = arith.constant 0 : index
    %60 = vector.load %arg3[%c0_37, %c2_38, %c0_39, %c0_40] : memref<2x4x8x128xf32, #tpu.memory_space<vmem>>, vector<1x1x8x128xf32>
    %61 = vector.shape_cast %60 : vector<1x1x8x128xf32> to vector<8x128xf32>
    %62 = vector.shape_cast %61 : vector<8x128xf32> to vector<1x8x128xf32>
    %c1_41 = arith.constant 1 : index
    %c2_42 = arith.constant 2 : index
    %c0_43 = arith.constant 0 : index
    %c0_44 = arith.constant 0 : index
    %63 = vector.load %arg3[%c1_41, %c2_42, %c0_43, %c0_44] : memref<2x4x8x128xf32, #tpu.memory_space<vmem>>, vector<1x1x8x128xf32>
    %64 = vector.shape_cast %63 : vector<1x1x8x128xf32> to vector<8x128xf32>
    %65 = vector.shape_cast %64 : vector<8x128xf32> to vector<1x8x128xf32>
    %66 = vector.broadcast %56 : vector<8x1x128xf32> to vector<8x8x128xf32>
    %67 = vector.broadcast %62 : vector<1x8x128xf32> to vector<8x8x128xf32>
    %68 = arith.mulf %66, %67 : vector<8x8x128xf32>
    %69 = vector.broadcast %59 : vector<8x1x128xf32> to vector<8x8x128xf32>
    %70 = vector.broadcast %65 : vector<1x8x128xf32> to vector<8x8x128xf32>
    %71 = arith.mulf %69, %70 : vector<8x8x128xf32>
    %72 = arith.subf %68, %71 : vector<8x8x128xf32>
    %73 = arith.addf %45, %72 : vector<8x8x128xf32>
    %74 = vector.broadcast %56 : vector<8x1x128xf32> to vector<8x8x128xf32>
    %75 = vector.broadcast %65 : vector<1x8x128xf32> to vector<8x8x128xf32>
    %76 = arith.mulf %74, %75 : vector<8x8x128xf32>
    %77 = vector.broadcast %59 : vector<8x1x128xf32> to vector<8x8x128xf32>
    %78 = vector.broadcast %62 : vector<1x8x128xf32> to vector<8x8x128xf32>
    %79 = arith.mulf %77, %78 : vector<8x8x128xf32>
    %80 = arith.addf %76, %79 : vector<8x8x128xf32>
    %81 = arith.addf %53, %80 : vector<8x8x128xf32>
    %c0_45 = arith.constant 0 : index
    %c3 = arith.constant 3 : index
    %c0_46 = arith.constant 0 : index
    %c0_47 = arith.constant 0 : index
    %82 = vector.load %arg2[%c0_45, %c3, %c0_46, %c0_47] : memref<2x4x8x128xf32, #tpu.memory_space<vmem>>, vector<1x1x8x128xf32>
    %83 = vector.shape_cast %82 : vector<1x1x8x128xf32> to vector<8x128xf32>
    %84 = vector.shape_cast %83 : vector<8x128xf32> to vector<8x1x128xf32>
    %c1_48 = arith.constant 1 : index
    %c3_49 = arith.constant 3 : index
    %c0_50 = arith.constant 0 : index
    %c0_51 = arith.constant 0 : index
    %85 = vector.load %arg2[%c1_48, %c3_49, %c0_50, %c0_51] : memref<2x4x8x128xf32, #tpu.memory_space<vmem>>, vector<1x1x8x128xf32>
    %86 = vector.shape_cast %85 : vector<1x1x8x128xf32> to vector<8x128xf32>
    %87 = vector.shape_cast %86 : vector<8x128xf32> to vector<8x1x128xf32>
    %c0_52 = arith.constant 0 : index
    %c3_53 = arith.constant 3 : index
    %c0_54 = arith.constant 0 : index
    %c0_55 = arith.constant 0 : index
    %88 = vector.load %arg3[%c0_52, %c3_53, %c0_54, %c0_55] : memref<2x4x8x128xf32, #tpu.memory_space<vmem>>, vector<1x1x8x128xf32>
    %89 = vector.shape_cast %88 : vector<1x1x8x128xf32> to vector<8x128xf32>
    %90 = vector.shape_cast %89 : vector<8x128xf32> to vector<1x8x128xf32>
    %c1_56 = arith.constant 1 : index
    %c3_57 = arith.constant 3 : index
    %c0_58 = arith.constant 0 : index
    %c0_59 = arith.constant 0 : index
    %91 = vector.load %arg3[%c1_56, %c3_57, %c0_58, %c0_59] : memref<2x4x8x128xf32, #tpu.memory_space<vmem>>, vector<1x1x8x128xf32>
    %92 = vector.shape_cast %91 : vector<1x1x8x128xf32> to vector<8x128xf32>
    %93 = vector.shape_cast %92 : vector<8x128xf32> to vector<1x8x128xf32>
    %94 = vector.broadcast %84 : vector<8x1x128xf32> to vector<8x8x128xf32>
    %95 = vector.broadcast %90 : vector<1x8x128xf32> to vector<8x8x128xf32>
    %96 = arith.mulf %94, %95 : vector<8x8x128xf32>
    %97 = vector.broadcast %87 : vector<8x1x128xf32> to vector<8x8x128xf32>
    %98 = vector.broadcast %93 : vector<1x8x128xf32> to vector<8x8x128xf32>
    %99 = arith.mulf %97, %98 : vector<8x8x128xf32>
    %100 = arith.subf %96, %99 : vector<8x8x128xf32>
    %101 = arith.addf %73, %100 : vector<8x8x128xf32>
    %102 = vector.broadcast %84 : vector<8x1x128xf32> to vector<8x8x128xf32>
    %103 = vector.broadcast %93 : vector<1x8x128xf32> to vector<8x8x128xf32>
    %104 = arith.mulf %102, %103 : vector<8x8x128xf32>
    %105 = vector.broadcast %87 : vector<8x1x128xf32> to vector<8x8x128xf32>
    %106 = vector.broadcast %90 : vector<1x8x128xf32> to vector<8x8x128xf32>
    %107 = arith.mulf %105, %106 : vector<8x8x128xf32>
    %108 = arith.addf %104, %107 : vector<8x8x128xf32>
    %109 = arith.addf %81, %108 : vector<8x8x128xf32>
    %c0_60 = arith.constant 0 : index
    %c0_61 = arith.constant 0 : index
    %c0_62 = arith.constant 0 : index
    %c0_63 = arith.constant 0 : index
    %110 = vector.load %arg4[%c0_60, %c0_61, %c0_62, %c0_63] : memref<2x8x8x128xf32, #tpu.memory_space<vmem>>, vector<1x8x8x128xf32>
    %111 = vector.shape_cast %110 : vector<1x8x8x128xf32> to vector<8x8x128xf32>
    %112 = vector.shape_cast %101 : vector<8x8x128xf32> to vector<1x8x8x128xf32>
    tpu.vector_store %arg4[%c0_60, %c0_61, %c0_62, %c0_63], %112 {strides = array<i32>} : memref<2x8x8x128xf32, #tpu.memory_space<vmem>>, vector<1x8x8x128xf32>,
    %c1_64 = arith.constant 1 : index
    %c0_65 = arith.constant 0 : index
    %c0_66 = arith.constant 0 : index
    %c0_67 = arith.constant 0 : index
    %113 = vector.load %arg4[%c1_64, %c0_65, %c0_66, %c0_67] : memref<2x8x8x128xf32, #tpu.memory_space<vmem>>, vector<1x8x8x128xf32>
    %114 = vector.shape_cast %113 : vector<1x8x8x128xf32> to vector<8x8x128xf32>
    %115 = vector.shape_cast %109 : vector<8x8x128xf32> to vector<1x8x8x128xf32>
    tpu.vector_store %arg4[%c1_64, %c0_65, %c0_66, %c0_67], %115 {strides = array<i32>} : memref<2x8x8x128xf32, #tpu.memory_space<vmem>>, vector<1x8x8x128xf32>,
    return
  }
  func.func @transform_0(%arg0: i32, %arg1: i32) -> (i32, i32, i32, i32) {
    %c0_i32 = arith.constant 0 : i32
    %c0_i32_0 = arith.constant 0 : i32
    %c0_i32_1 = arith.constant 0 : i32
    %c0_i32_2 = arith.constant 0 : i32
    return %c0_i32, %c0_i32_0, %arg1, %c0_i32_1 : i32, i32, i32, i32
  }
  func.func @transform_1(%arg0: i32, %arg1: i32) -> (i32, i32, i32, i32) {
    %c0_i32 = arith.constant 0 : i32
    %c0_i32_0 = arith.constant 0 : i32
    %c0_i32_1 = arith.constant 0 : i32
    %c0_i32_2 = arith.constant 0 : i32
    return %c0_i32, %c0_i32_0, %arg0, %c0_i32_1 : i32, i32, i32, i32
  }
  func.func @transform_2(%arg0: i32, %arg1: i32) -> (i32, i32, i32, i32) {
    %c0_i32 = arith.constant 0 : i32
    %c0_i32_0 = arith.constant 0 : i32
    %c0_i32_1 = arith.constant 0 : i32
    return %c0_i32, %arg1, %arg0, %c0_i32_0 : i32, i32, i32, i32
  }
}

</mosaic_0001>

<bundles_post_ra>
// kernel: custom-call
= control target key start
LH: loop header
LB: loop body
LE: loop exit
PB: predicated region body
PF: predicated region fallthrough
CT: control target
= control target key end

     0   :  { %2 = vsyncpa [#allocation0], 0  ;;  %s61_s0 = inlined_call_operand.hbm [shape: c64[4,4,4,4], index: 0, kind: input, shape index: {}]   ;;  %s62_s1 = inlined_call_operand.vmem [shape: f32[4,4,4,4], index: 1, kind: output, shape index: {}]  }
   0x1   :  { %s3_s8 = sshll.u32 %s62_s1, 4  ;;  %s9_s11 = scalar_lea.hbm %s61_s0, 1024  ;;  %s4_s8 = int_to_ptr.vmem [resolvable:$true] %s3_s8 }
   0x2   :  { %p10_p0 = scmp.ne.s32.totalorder %s61_s0, %s9_s11  ;;  %s11_s16 = scalar_lea.hbm %s61_s0, 2048 }
   0x3   :  { %p12_p1 = scmp.lt.u32.totalorder %s11_s16, %s9_s11  ;;  %p13_p2 = scmp.lt.u32.totalorder %s9_s11, %s61_s0 }
   0x5   :  { %p14_p3 = por %p13_p2, %p12_p1 }
   0x7   :  { %p15_p4 = pnand %p14_p3, %p10_p0 }
   0x9   :  { %18 = shalt.err (!%p15_p4)  }
   0xa   :  { %s19_s1 = scalar_lea.vmem %s4_s8, 1024  ;;  %p24_p6 = scmp.lt.s32.totalorder %s4_s8, %s4_s8 }
   0xb   :  { %p20_p5 = scmp.ne.s32.totalorder %s4_s8, %s19_s1  ;;  %p25_p7 = scmp.lt.s32.totalorder %s19_s1, %s19_s1 }
   0xd   :  { %p26_p8 = por %p25_p7, %p24_p6 }
   0xf   :  { %p27_p9 = pnand %p26_p8, %p20_p5 }
  0x11   :  { %30 = shalt.err (!%p27_p9)  }
  0x12   :  { %6 = dma.hbm_to_vmem [thread:$0]  %s61_s0, 1024, %s4_s8, [#allocation0] }
  0x13   :  { %31 = dma.done.wait [#allocation0], 1024  }
  0x14   :  { %32 = vsyncadd [#allocation0], 4294966272 }
  0x15   :  { %8 = vsyncpa [#allocation0], 1 }

// kernel: custom-call.1
= control target key start
LH: loop header
LB: loop body
LE: loop exit
PB: predicated region body
PF: predicated region fallthrough
CT: control target
= control target key end

     0   :  { %s59_s0 = inlined_call_operand.hbm [shape: c64[4,4,4,4], index: 0, kind: input, shape index: {}]   ;;  %s60_s1 = inlined_call_operand.vmem [shape: f32[4,4,4,4], index: 1, kind: output, shape index: {}]  }
   0x1   :  { %s2_s8 = scalar_lea.hbm %s59_s0, 1024 }
   0x2   :  { %3 = vsyncpa [#allocation0], 0  ;;  %s4_s11 = sshll.u32 %s60_s1, 4  ;;  %s34_s14 = scalar_lea.hbm %s59_s0, 2048  ;;  %s5_s11 = int_to_ptr.vmem [resolvable:$true] %s4_s11 }
   0x3   :  { %p11_p0 = scmp.ne.s32.totalorder %s2_s8, %s34_s14  ;;  %p13_p1 = scmp.lt.u32.totalorder %s2_s8, %s59_s0 }
   0x4   :  { %p14_p2 = scmp.lt.u32.totalorder %s34_s14, %s34_s14  ;;  %p16_p4 = scmp.lt.u32.totalorder %s34_s14, %s2_s8 }
   0x6   :  { %p15_p3 = por %p14_p2, %p13_p1 }
   0x8   :  { %p17_p5 = por %p16_p4, %p15_p3 }
   0xa   :  { %p18_p6 = pnand %p17_p5, %p11_p0 }
   0xc   :  { %21 = shalt.err (!%p18_p6)  }
   0xd   :  { %s22_s17 = scalar_lea.vmem %s5_s11, 1024  ;;  %p27_p8 = scmp.lt.s32.totalorder %s5_s11, %s5_s11 }
   0xe   :  { %p23_p7 = scmp.ne.s32.totalorder %s5_s11, %s22_s17  ;;  %p28_p9 = scmp.lt.s32.totalorder %s22_s17, %s22_s17 }
  0x10   :  { %p29_p10 = por %p28_p9, %p27_p8 }
  0x12   :  { %p30_p11 = pnand %p29_p10, %p23_p7 }
  0x14   :  { %33 = shalt.err (!%p30_p11)  }
  0x15   :  { %7 = dma.hbm_to_vmem [thread:$0]  %s2_s8, 1024, %s5_s11, [#allocation0] }
  0x16   :  { %35 = dma.done.wait [#allocation0], 1024  }
  0x17   :  { %36 = vsyncadd [#allocation0], 4294966272 }
  0x18   :  { %9 = vsyncpa [#allocation0], 1 }

// kernel: reverse.0
= control target key start
LH: loop header
LB: loop body
LE: loop exit
PB: predicated region body
PF: predicated region fallthrough
CT: control target
= control target key end

     0   :  { %v71_v3 = vlaneseq  ;;  %v64_v9 = vld [vmem:[#allocation0 + $0x7] ss:$-1 sm:$0xff]  ;;  %v78_v12 = vld [vmem:[#allocation0 + $0x17] ss:$-1 sm:$0xff]  ;;  %s329_s0 = inlined_call_operand.vmem [shape: f32[2,4,16,7], index: 0, kind: input, shape index: {}]   ;;  %s330_s1 = inlined_call_operand.vmem [shape: f32[2,4,16,7], index: 1, kind: output, shape index: {}]  }
   0x1   :  { %v44_v0 = vld [vmem:[%s329_s0] sm:$0xff]  ;;  %v46_v1 = vld [vmem:[%s329_s0 + $0x8] sm:$0xff]  ;;  %v48_v2 = vld [vmem:[%s329_s0 + $0x10] sm:$0xff]  ;;  %v65_v10 = vrot.slane %v64_v9, 1  ;;  %v79_v14 = vrot.slane %v78_v12, 1 }
   0x2   :  { %45 = vst [vmem:[#allocation0 + $0x8] sm:$0xff] %v44_v0  ;;  %47 = vst [vmem:[#allocation0 + $0x18] sm:$0xff] %v46_v1  ;;  %v50_v4 = vld [vmem:[%s329_s0 + $0x18] sm:$0xff]  ;;  %v52_v5 = vld [vmem:[%s329_s0 + $0x20] sm:$0xff]  ;;  %v72_v11 = vshrl.u32 %v71_v3, 7 }
   0x3   :  { %49 = vst [vmem:[#allocation0 + $0x28] sm:$0xff] %v48_v2  ;;  %v54_v6 = vld [vmem:[%s329_s0 + $0x28] sm:$0xff]  ;;  %51 = vst [vmem:[#allocation0 + $0x38] sm:$0xff] %v50_v4  ;;  %v56_v7 = vld [vmem:[%s329_s0 + $0x30] sm:$0xff] }
   0x4   :  { %53 = vst [vmem:[#allocation0 + $0x48] sm:$0xff] %v52_v5  ;;  %55 = vst [vmem:[#allocation0 + $0x58] sm:$0xff] %v54_v6  ;;  %v58_v8 = vld [vmem:[%s329_s0 + $0x38] sm:$0xff]  ;;  %v92_v13 = vld [vmem:[#allocation0 + $0x27] ss:$-1 sm:$0xff]  ;;  %vm73_vm0 = vcmp.lt.s32.totalorder %v72_v11, 7 }
   0x5   :  { %57 = vst [vmem:[#allocation0 + $0x68] sm:$0xff] %v56_v7  ;;  %59 = vst [vmem:[#allocation0 + $0x78] sm:$0xff] %v58_v8  ;;  %v93_v15 = vrot.slane %v92_v13, 1  ;;  %v106_v16 = vld [vmem:[#allocation0 + $0x37] ss:$-1 sm:$0xff] }
   0x6   :  { %66 = vst [vmem:[#allocation1] sm:$0xff] %v65_v10  ;;  %v107_v17 = vrot.slane %v106_v16, 1  ;;  %v120_v18 = vld [vmem:[#allocation0 + $0x47] ss:$-1 sm:$0xff]  ;;  %v134_v19 = vld [vmem:[#allocation0 + $0x57] ss:$-1 sm:$0xff] }
   0x7   :  { %80 = vst [vmem:[#allocation1 + $0x8] sm:$0xff] %v79_v14  ;;  %94 = vst [vmem:[#allocation1 + $0x10] sm:$0xff] %v93_v15  ;;  %v121_v20 = vrot.slane %v120_v18, 1  ;;  %v135_v21 = vrot.slane %v134_v19, 1  ;;  %v148_v22 = vld [vmem:[#allocation0 + $0x67] ss:$-1 sm:$0xff] }
   0x8   :  { %v162_v23 = vld [vmem:[#allocation0 + $0x77] ss:$-1 sm:$0xff]  ;;  %108 = vst [vmem:[#allocation1 + $0x18] sm:$0xff] %v107_v17  ;;  %v149_v24 = vrot.slane %v148_v22, 1 }
   0x9   :  { %v163_v25 = vrot.slane %v162_v23, 1  ;;  %v69_v26 = vld [vmem:[#allocation0 + $0xf] ss:$-1 sm:$0xff]  ;;  %v83_v27 = vld [vmem:[#allocation0 + $0x1f] ss:$-1 sm:$0xff]  ;;  %122 = vst [vmem:[#allocation1 + $0x20] sm:$0xff] %v121_v20 }
   0xa   :  { %v97_v28 = vld [vmem:[#allocation0 + $0x2f] ss:$-1 sm:$0xff]  ;;  %136 = vst [vmem:[#allocation1 + $0x28] sm:$0xff] %v135_v21  ;;  %v70_v29 = vrot.slane %v69_v26, 1  ;;  %v84_v30 = vrot.slane %v83_v27, 1  ;;  %150 = vst [vmem:[#allocation1 + $0x30] sm:$0xff] %v149_v24 }
   0xb   :  { %v98_v31 = vrot.slane %v97_v28, 1  ;;  %v111_v32 = vld [vmem:[#allocation0 + $0x3f] ss:$-1 sm:$0xff]  ;;  %164 = vst [vmem:[#allocation1 + $0x38] sm:$0xff] %v163_v25  ;;  %v125_v34 = vld [vmem:[#allocation0 + $0x4f] ss:$-1 sm:$0xff] }
   0xc   :  { %v112_v33 = vrot.slane %v111_v32, 1  ;;  %v139_v35 = vld [vmem:[#allocation0 + $0x5f] ss:$-1 sm:$0xff]  ;;  %74 = vst.msk [vmem:[#allocation1] sm:$0xff] %vm73_vm0, %v70_v29  ;;  %88 = vst.msk [vmem:[#allocation1 + $0x8] sm:$0xff] %vm73_vm0, %v84_v30  ;;  %v126_v36 = vrot.slane %v125_v34, 1 }
   0xd   :  { %102 = vst.msk [vmem:[#allocation1 + $0x10] sm:$0xff] %vm73_vm0, %v98_v31  ;;  %v140_v37 = vrot.slane %v139_v35, 1  ;;  %v153_v38 = vld [vmem:[#allocation0 + $0x6f] ss:$-1 sm:$0xff]  ;;  %v167_v39 = vld [vmem:[#allocation0 + $0x7f] ss:$-1 sm:$0xff] }
   0xe   :  { %116 = vst.msk [vmem:[#allocation1 + $0x18] sm:$0xff] %vm73_vm0, %v112_v33  ;;  %v154_v40 = vrot.slane %v153_v38, 1  ;;  %v168_v41 = vrot.slane %v167_v39, 1  ;;  %130 = vst.msk [vmem:[#allocation1 + $0x20] sm:$0xff] %vm73_vm0, %v126_v36 }
   0xf   :  { %144 = vst.msk [vmem:[#allocation1 + $0x28] sm:$0xff] %vm73_vm0, %v140_v37 }
  0x10   :  { %158 = vst.msk [vmem:[#allocation1 + $0x30] sm:$0xff] %vm73_vm0, %v154_v40  ;;  %172 = vst.msk [vmem:[#allocation1 + $0x38] sm:$0xff] %vm73_vm0, %v168_v41 }
  0x13   :  { %v214_v42 = vld [vmem:[#allocation1] sm:$0xff]  ;;  %v216_v43 = vld [vmem:[#allocation1 + $0x8] sm:$0xff] }
  0x14   :  { %v218_v44 = vld [vmem:[#allocation1 + $0x10] sm:$0xff]  ;;  %215 = vst [vmem:[%s330_s1] sm:$0xff] %v214_v42  ;;  %217 = vst [vmem:[%s330_s1 + $0x8] sm:$0xff] %v216_v43 }
  0x15   :  { %219 = vst [vmem:[%s330_s1 + $0x10] sm:$0xff] %v218_v44  ;;  %v220_v45 = vld [vmem:[#allocation1 + $0x18] sm:$0xff]  ;;  %v222_v46 = vld [vmem:[#allocation1 + $0x20] sm:$0xff] }
  0x16   :  { %221 = vst [vmem:[%s330_s1 + $0x18] sm:$0xff] %v220_v45  ;;  %v224_v47 = vld [vmem:[#allocation1 + $0x28] sm:$0xff]  ;;  %223 = vst [vmem:[%s330_s1 + $0x20] sm:$0xff] %v222_v46 }
  0x17   :  { %225 = vst [vmem:[%s330_s1 + $0x28] sm:$0xff] %v224_v47  ;;  %v226_v48 = vld [vmem:[#allocation1 + $0x30] sm:$0xff]  ;;  %v228_v49 = vld [vmem:[#allocation1 + $0x38] sm:$0xff] }
  0x18   :  { %227 = vst [vmem:[%s330_s1 + $0x30] sm:$0xff] %v226_v48  ;;  %229 = vst [vmem:[%s330_s1 + $0x38] sm:$0xff] %v228_v49 }

// kernel: spectral_conv2d_new.1
= control target key start
LH: loop header
LB: loop body
LE: loop exit
PB: predicated region body
PF: predicated region fallthrough
CT: control target
= control target key end

     0   :  { %v17_v0 = vlaneseq  ;;  %v1053_v2 = vmov 1966171168   ;;  %s1910_s0 = inlined_call_operand.vmem [shape: f32[2,4,8,128], index: 0, kind: input, shape index: {}]   ;;  %s1911_s1 = inlined_call_operand.vmem [shape: f32[2,4,8,128], index: 1, kind: input, shape index: {}]   ;;  %s1912_s2 = inlined_call_operand.vmem [shape: f32[2,8,8,128], index: 2, kind: output, shape index: {}]  }
   0x1   :  { %v1072_v1 = vld [vmem:[%s1910_s0] sm:$0xff]  ;;  %v15_v3 = vunpack.c.l.s4 %v1053_v2  ;;  %v1082_v6 = vld [vmem:[%s1910_s0 + $0x8] sm:$0xff]  ;;  %v1092_v9 = vld [vmem:[%s1910_s0 + $0x10] sm:$0xff] }
   0x2   :  { %v1077_v4 = vld [vmem:[%s1910_s0 + $0x20] sm:$0xff]  ;;  %v18_v5 = vshrl.u32 %v17_v0, 7  ;;  %v1087_v7 = vld [vmem:[%s1910_s0 + $0x28] sm:$0xff]  ;;  %v1097_v10 = vld [vmem:[%s1910_s0 + $0x30] sm:$0xff] }
   0x3   :  { %v16_v8 = vunpack.c.0.s8 %v15_v3  ;;  %v1110_v15 = vld [vmem:[%s1910_s0 + $0x18] sm:$0xff]  ;;  %v1156_v33 = vld [vmem:[%s1911_s1] sm:$0xff]  ;;  %v1172_v37 = vld [vmem:[%s1911_s1 + $0x8] sm:$0xff] }
   0x4   :  { %v1105_v14 = vsub.s32 0, %v18_v5  ;;  %v1115_v16 = vld [vmem:[%s1910_s0 + $0x38] sm:$0xff]  ;;  %v1161_v34 = vld [vmem:[%s1911_s1 + $0x20] sm:$0xff]  ;;  %v1177_v38 = vld [vmem:[%s1911_s1 + $0x28] sm:$0xff] }
   0x5   :  { %v1103_v13 = vsub.s32 %v16_v8, %v18_v5  ;;  %v1188_v41 = vld [vmem:[%s1911_s1 + $0x10] sm:$0xff]  ;;  %v1221_v49 = vld [vmem:[%s1911_s1 + $0x18] sm:$0xff] }
   0x6   :  { %v1216_v48 = vld [vmem:[%s1911_s1 + $0x30] sm:$0xff]  ;;  %v1226_v50 = vld [vmem:[%s1911_s1 + $0x38] sm:$0xff] }
   0x7   :  { %v20_v23 = vrot.slane %v1072_v1, %v1103_v13  ;;  %v72_v24 = vrot.slane %v1077_v4, %v1103_v13  ;;  %v255_v25 = vrot.slane %v1082_v6, %v1103_v13  ;;  %v307_v26 = vrot.slane %v1087_v7, %v1103_v13 }
   0x8   :  { %v507_v27 = vrot.slane %v1092_v9, %v1103_v13  ;;  %v559_v28 = vrot.slane %v1097_v10, %v1103_v13  ;;  %v759_v29 = vrot.slane %v1110_v15, %v1103_v13  ;;  %v1145_v30 = vrot.slane %v1115_v16, %v1103_v13 }
   0x9   :  { %v1148_v31 = vrot.slane %v20_v23, %v1103_v13  ;;  %v1151_v32 = vrot.slane %v72_v24, %v1103_v13  ;;  %v1164_v35 = vrot.slane %v255_v25, %v1103_v13  ;;  %v1167_v36 = vrot.slane %v307_v26, %v1103_v13 }
   0xa   :  { %v1180_v39 = vrot.slane %v507_v27, %v1103_v13  ;;  %v1183_v40 = vrot.slane %v559_v28, %v1103_v13  ;;  %v1191_v42 = vrot.slane %v759_v29, %v1103_v13  ;;  %v1195_v43 = vrot.slane %v1145_v30, %v1103_v13 }
   0xb   :  { %v1199_v44 = vrot.slane %v1148_v31, %v1105_v14  ;;  %v1203_v45 = vrot.slane %v1151_v32, %v1105_v14  ;;  %v1207_v46 = vrot.slane %v1164_v35, %v1105_v14  ;;  %v1211_v47 = vrot.slane %v1167_v36, %v1105_v14 }
   0xc   :  { %v1230_v51 = vrot.slane %v1180_v39, %v1105_v14  ;;  %v1234_v52 = vrot.slane %v1183_v40, %v1105_v14  ;;  %v1238_v53 = vrot.slane %v1191_v42, %v1105_v14  ;;  %v1242_v54 = vrot.slane %v1195_v43, %v1105_v14 }
   0xd   :  { %v157_v55 = vmul.f32 %v1199_v44, %v1156_v33  ;;  %v205_v56 = vmul.f32 %v1161_v34, %v1203_v45  ;;  %v393_v57 = vmul.f32 %v1172_v37, %v1207_v46  ;;  %v441_v58 = vmul.f32 %v1177_v38, %v1211_v47 }
   0xe   :  { %v645_v59 = vmul.f32 %v1188_v41, %v1230_v51  ;;  %v693_v60 = vmul.f32 %v1216_v48, %v1234_v52  ;;  %v897_v61 = vmul.f32 %v1221_v49, %v1238_v53  ;;  %v945_v62 = vmul.f32 %v1226_v50, %v1242_v54 }
   0xf   :  { %v213_v63 = vsub.f32 %v157_v55, %v205_v56  ;;  %v449_v0 = vsub.f32 %v393_v57, %v441_v58  ;;  %v28_v2 = vcombine.high %v20_v23, %v20_v23  ;;  %v80_v3 = vcombine.high %v72_v24, %v72_v24 }
  0x10   :  { %v701_v5 = vsub.f32 %v645_v59, %v693_v60  ;;  %v953_v8 = vsub.f32 %v897_v61, %v945_v62  ;;  %v263_v22 = vcombine.high %v255_v25, %v255_v25  ;;  %v315_v21 = vcombine.high %v307_v26, %v307_v26 }
  0x11   :  { %v457_v20 = vadd.f32 %v449_v0, %v213_v63  ;;  %v1261_v19 = vrot.slane %v28_v2, %v1103_v13  ;;  %v1264_v18 = vrot.slane %v80_v3, %v1103_v13  ;;  %v515_v17 = vcombine.high %v507_v27, %v507_v27 }
  0x12   :  { %v1267_v12 = vrot.slane %v263_v22, %v1103_v13  ;;  %v1270_v55 = vrot.slane %v315_v21, %v1103_v13  ;;  %v567_v23 = vcombine.high %v559_v28, %v559_v28  ;;  %v767_v24 = vcombine.high %v759_v29, %v759_v29 }
  0x13   :  { %v709_v56 = vadd.f32 %v701_v5, %v457_v20  ;;  %v1274_v25 = vrot.slane %v1261_v19, %v1105_v14  ;;  %v1278_v26 = vrot.slane %v1264_v18, %v1105_v14  ;;  %v1281_v57 = vrot.slane %v515_v17, %v1103_v13 }
  0x14   :  { %v1285_v22 = vrot.slane %v1267_v12, %v1105_v14  ;;  %v1289_v21 = vrot.slane %v1270_v55, %v1105_v14  ;;  %v1292_v20 = vrot.slane %v567_v23, %v1103_v13  ;;  %v1295_v27 = vrot.slane %v767_v24, %v1103_v13 }
  0x15   :  { %v961_v28 = vadd.f32 %v953_v8, %v709_v56  ;;  %v158_v29 = vmul.f32 %v1274_v25, %v1156_v33  ;;  %v206_v17 = vmul.f32 %v1161_v34, %v1278_v26  ;;  %v1303_v58 = vrot.slane %v1281_v57, %v1105_v14 }
  0x16   :  { %v394_v59 = vmul.f32 %v1172_v37, %v1285_v22  ;;  %v442_v60 = vmul.f32 %v1177_v38, %v1289_v21  ;;  %v1311_v61 = vrot.slane %v1292_v20, %v1105_v14  ;;  %v819_v62 = vcombine.high %v1145_v30, %v1145_v30 }
  0x17   :  { %1001 = vst [vmem:[%s1912_s2] sm:$0xff] %v961_v28  ;;  %v214_v63 = vsub.f32 %v158_v29, %v206_v17  ;;  %v646_v0 = vmul.f32 %v1188_v41, %v1303_v58  ;;  %v1322_v2 = vrot.slane %v1295_v27, %v1105_v14  ;;  %v58_v3 = vcombine.high %v1148_v31, %v1148_v31 }
  0x18   :  { %v450_v5 = vsub.f32 %v394_v59, %v442_v60  ;;  %v694_v8 = vmul.f32 %v1216_v48, %v1311_v61  ;;  %v1329_v30 = vrot.slane %v819_v62, %v1103_v13  ;;  %v110_v23 = vcombine.high %v1151_v32, %v1151_v32 }
  0x19   :  { %v898_v24 = vmul.f32 %v1221_v49, %v1322_v2  ;;  %v1336_v56 = vrot.slane %v58_v3, %v1105_v14  ;;  %v293_v28 = vcombine.high %v1164_v35, %v1164_v35  ;;  %v345_v31 = vcombine.high %v1167_v36, %v1167_v36 }
  0x1a   :  { %v458_v29 = vadd.f32 %v450_v5, %v214_v63  ;;  %v702_v17 = vsub.f32 %v646_v0, %v694_v8  ;;  %v1344_v59 = vrot.slane %v1329_v30, %v1105_v14  ;;  %v1347_v32 = vrot.slane %v110_v23, %v1105_v14 }
  0x1b   :  { %v159_v60 = vmul.f32 %v1336_v56, %v1156_v33  ;;  %v1352_v62 = vrot.slane %v293_v28, %v1105_v14  ;;  %v1355_v35 = vrot.slane %v345_v31, %v1105_v14  ;;  %v545_v36 = vcombine.high %v1180_v39, %v1180_v39 }
  0x1c   :  { %1939 = vst [vmem:[#allocation2_spill] sm:$0xff] %v1347_v32  ;;  %v710_v63 = vadd.f32 %v702_v17, %v458_v29  ;;  %v946_v0 = vmul.f32 %v1226_v50, %v1344_v59  ;;  %v207_v3 = vmul.f32 %v1161_v34, %v1347_v32  ;;  %v597_v5 = vcombine.high %v1183_v40, %v1183_v40 }
  0x1d   :  { %1940 = vst [vmem:[#allocation3_spill] sm:$0xff] %v1352_v62  ;;  %1941 = vst [vmem:[#allocation4_spill] sm:$0xff] %v1355_v35  ;;  %v395_v8 = vmul.f32 %v1172_v37, %v1352_v62  ;;  %v443_v23 = vmul.f32 %v1177_v38, %v1355_v35  ;;  %v1370_v28 = vrot.slane %v545_v36, %v1105_v14 }
  0x1e   :  { %v797_v39 = vcombine.high %v1191_v42, %v1191_v42  ;;  %v954_v31 = vsub.f32 %v898_v24, %v946_v0  ;;  %v215_v29 = vsub.f32 %v159_v60, %v207_v3  ;;  %v1375_v17 = vrot.slane %v597_v5, %v1105_v14 }
  0x1f   :  { %v849_v40 = vcombine.high %v1195_v43, %v1195_v43  ;;  %v451_v11 = vsub.f32 %v395_v8, %v443_v23  ;;  %v647_v62 = vmul.f32 %v1188_v41, %v1370_v28  ;;  %v60_v36 = vcombine.high %v1261_v19, %v1261_v19 }
  0x20   :  { %v1382_v35 = vrot.slane %v797_v39, %v1105_v14  ;;  %v962_v32 = vadd.f32 %v954_v31, %v710_v63  ;;  %v695_v42 = vmul.f32 %v1216_v48, %v1375_v17  ;;  %v112_v43 = vcombine.high %v1264_v18, %v1264_v18 }
  0x21   :  { %v1389_v24 = vrot.slane %v849_v40, %v1105_v14  ;;  %v459_v60 = vadd.f32 %v451_v11, %v215_v29  ;;  %v1396_v3 = vrot.slane %v60_v36, %v1105_v14  ;;  %v295_v19 = vcombine.high %v1267_v12, %v1267_v12 }
  0x22   :  { %v899_v0 = vmul.f32 %v1221_v49, %v1382_v35  ;;  %1002 = vst [vmem:[%s1912_s2 + $0x8] sm:$0xff] %v962_v32  ;;  %v703_v63 = vsub.f32 %v647_v62, %v695_v42  ;;  %v1406_v18 = vrot.slane %v112_v43, %v1105_v14  ;;  %v347_v11 = vcombine.high %v1270_v55, %v1270_v55 }
  0x23   :  { %v947_v5 = vmul.f32 %v1226_v50, %v1389_v24  ;;  %v160_v8 = vmul.f32 %v1396_v3, %v1156_v33  ;;  %v1413_v23 = vrot.slane %v295_v19, %v1105_v14  ;;  %v547_v12 = vcombine.high %v1281_v57, %v1281_v57 }
  0x24   :  { %1942 = vst [vmem:[#allocation5_spill] sm:$0xff] %v1406_v18  ;;  %v599_v32 = vcombine.high %v1292_v20, %v1292_v20  ;;  %v711_v62 = vadd.f32 %v703_v63, %v459_v60  ;;  %v208_v31 = vmul.f32 %v1161_v34, %v1406_v18  ;;  %v1422_v29 = vrot.slane %v347_v11, %v1105_v14 }
  0x25   :  { %1943 = vst [vmem:[#allocation6_spill] sm:$0xff] %v1413_v23  ;;  %v955_v39 = vsub.f32 %v899_v0, %v947_v5  ;;  %v396_v55 = vmul.f32 %v1172_v37, %v1413_v23  ;;  %v1427_v40 = vrot.slane %v547_v12, %v1105_v14  ;;  %v799_v57 = vcombine.high %v1295_v27, %v1295_v27 }
  0x26   :  { %1944 = vst [vmem:[#allocation7_spill] sm:$0xff] %v1422_v29  ;;  %v1430_v36 = vrot.slane %v599_v32, %v1105_v14  ;;  %v216_v42 = vsub.f32 %v160_v8, %v208_v31  ;;  %v444_v43 = vmul.f32 %v1177_v38, %v1422_v29  ;;  %v851_v60 = vcombine.high %v1329_v30, %v1329_v30 }
  0x27   :  { %1945 = vst [vmem:[#allocation8_spill] sm:$0xff] %v1427_v40  ;;  %v963_v20 = vadd.f32 %v955_v39, %v711_v62  ;;  %v648_v0 = vmul.f32 %v1188_v41, %v1427_v40  ;;  %v1443_v63 = vrot.slane %v799_v57, %v1105_v14  ;;  %v1948_v27 = vcombine.high %v1072_v1, %v1072_v1 }
  0x28   :  { %1946 = vst [vmem:[#allocation9_spill] sm:$0xff] %v1430_v36  ;;  %v696_v19 = vmul.f32 %v1216_v48, %v1430_v36  ;;  %v452_v11 = vsub.f32 %v396_v55, %v444_v43  ;;  %v1453_v30 = vrot.slane %v851_v60, %v1105_v14  ;;  %v1950_v8 = vcombine.high %v1077_v4, %v1077_v4 }
  0x29   :  { %1947 = vst [vmem:[#allocation10_spill] sm:$0xff] %v1443_v63  ;;  %v27_v5 = vrot.slane %v1948_v27, %v1103_v13  ;;  %1003 = vst [vmem:[%s1912_s2 + $0x10] sm:$0xff] %v963_v20  ;;  %v1951_v32 = vcombine.high %v1082_v6, %v1082_v6  ;;  %v900_v39 = vmul.f32 %v1221_v49, %v1443_v63 }
  0x2a   :  { %1949 = vst [vmem:[#allocation11_spill] sm:$0xff] %v1453_v30  ;;  %v79_v12 = vrot.slane %v1950_v8, %v1103_v13  ;;  %v704_v1 = vsub.f32 %v648_v0, %v696_v19  ;;  %v1952_v55 = vcombine.high %v1087_v7, %v1087_v7  ;;  %v460_v20 = vadd.f32 %v452_v11, %v216_v42 }
  0x2b   :  { %v262_v62 = vrot.slane %v1951_v32, %v1103_v13  ;;  %v1466_v31 = vrot.slane %v27_v5, %v1103_v13  ;;  %v948_v4 = vmul.f32 %v1226_v50, %v1453_v30  ;;  %v1954_v7 = vcombine.high %v1092_v9, %v1092_v9 }
  0x2c   :  { %v314_v57 = vrot.slane %v1952_v55, %v1103_v13  ;;  %v1475_v43 = vrot.slane %v79_v12, %v1103_v13  ;;  %v1955_v19 = vcombine.high %v1097_v10, %v1097_v10  ;;  %v712_v11 = vadd.f32 %v704_v1, %v460_v20 }
  0x2d   :  { %v1478_v6 = vrot.slane %v262_v62, %v1103_v13  ;;  %v1482_v60 = vrot.slane %v1466_v31, %v1105_v14  ;;  %v514_v42 = vrot.slane %v1954_v7, %v1103_v13  ;;  %v956_v8 = vsub.f32 %v900_v39, %v948_v4 }
  0x2e   :  { %v1485_v0 = vrot.slane %v314_v57, %v1103_v13  ;;  %v566_v27 = vrot.slane %v1955_v19, %v1103_v13  ;;  %v1497_v32 = vrot.slane %v1475_v43, %v1105_v14  ;;  %v1959_v7 = vcombine.high %v1110_v15, %v1110_v15 }
  0x2f   :  { %1953 = vst [vmem:[#allocation12_spill] sm:$0xff] %v1482_v60  ;;  %v1501_v55 = vrot.slane %v1478_v6, %v1105_v14  ;;  %v161_v30 = vmul.f32 %v1482_v60, %v1156_v33  ;;  %v1510_v10 = vrot.slane %v514_v42, %v1103_v13  ;;  %v964_v39 = vadd.f32 %v956_v8, %v712_v11 }
  0x30   :  { %1956 = vst [vmem:[#allocation13_spill] sm:$0xff] %v1497_v32  ;;  %v1507_v9 = vrot.slane %v1485_v0, %v1105_v14  ;;  %v1513_v1 = vrot.slane %v566_v27, %v1103_v13  ;;  %v209_v20 = vmul.f32 %v1161_v34, %v1497_v32  ;;  %v766_v19 = vrot.slane %v1959_v7, %v1103_v13 }
  0x31   :  { %1957 = vst [vmem:[#allocation14_spill] sm:$0xff] %v1501_v55  ;;  %v397_v4 = vmul.f32 %v1172_v37, %v1501_v55  ;;  %v1527_v63 = vrot.slane %v1510_v10, %v1105_v14  ;;  %v1962_v8 = vcombine.high %v1115_v16, %v1115_v16  ;;  %1004 = vst [vmem:[%s1912_s2 + $0x18] sm:$0xff] %v964_v39 }
  0x32   :  { %1958 = vst [vmem:[#allocation15_spill] sm:$0xff] %v1507_v9  ;;  %v445_v60 = vmul.f32 %v1177_v38, %v1507_v9  ;;  %v1531_v11 = vrot.slane %v1513_v1, %v1105_v14  ;;  %v217_v15 = vsub.f32 %v161_v30, %v209_v20  ;;  %v1541_v7 = vrot.slane %v766_v19, %v1103_v13 }
  0x33   :  { %1960 = vst [vmem:[#allocation16_spill] sm:$0xff] %v1527_v63  ;;  %v818_v55 = vrot.slane %v1962_v8, %v1103_v13  ;;  %v29_v9 = vcombine.high %v27_v5, %v27_v5  ;;  %v81_v32 = vcombine.high %v79_v12, %v79_v12  ;;  %v649_v40 = vmul.f32 %v1188_v41, %v1527_v63 }
  0x34   :  { %1961 = vst [vmem:[#allocation17_spill] sm:$0xff] %v1531_v11  ;;  %v453_v36 = vsub.f32 %v397_v4, %v445_v60  ;;  %v697_v29 = vmul.f32 %v1216_v48, %v1531_v11  ;;  %v1552_v8 = vrot.slane %v1541_v7, %v1105_v14  ;;  %v264_v12 = vcombine.high %v262_v62, %v262_v62 }
  0x35   :  { %v1548_v16 = vrot.slane %v818_v55, %v1103_v13  ;;  %v1555_v30 = vrot.slane %v29_v9, %v1103_v13  ;;  %v1558_v5 = vrot.slane %v81_v32, %v1103_v13  ;;  %v316_v4 = vcombine.high %v314_v57, %v314_v57 }
  0x36   :  { %1963 = vst [vmem:[#allocation18_spill] sm:$0xff] %v1552_v8  ;;  %v461_v60 = vadd.f32 %v453_v36, %v217_v15  ;;  %v705_v39 = vsub.f32 %v649_v40, %v697_v29  ;;  %v901_v11 = vmul.f32 %v1221_v49, %v1552_v8  ;;  %v1575_v62 = vrot.slane %v264_v12, %v1103_v13 }
  0x37   :  { %v1562_v20 = vrot.slane %v1548_v16, %v1105_v14  ;;  %v1568_v63 = vrot.slane %v1555_v30, %v1105_v14  ;;  %v1572_v9 = vrot.slane %v1558_v5, %v1105_v14  ;;  %v1580_v36 = vrot.slane %v316_v4, %v1103_v13 }
  0x38   :  { %v713_v29 = vadd.f32 %v705_v39, %v461_v60  ;;  %v516_v57 = vcombine.high %v514_v42, %v514_v42  ;;  %v1588_v8 = vrot.slane %v1575_v62, %v1105_v14  ;;  %v568_v12 = vcombine.high %v566_v27, %v566_v27 }
  0x39   :  { %1964 = vst [vmem:[#allocation19_spill] sm:$0xff] %v1562_v20  ;;  %1965 = vst [vmem:[#allocation20_spill] sm:$0xff] %v1568_v63  ;;  %v949_v40 = vmul.f32 %v1226_v50, %v1562_v20  ;;  %v162_v32 = vmul.f32 %v1568_v63, %v1156_v33  ;;  %v210_v15 = vmul.f32 %v1161_v34, %v1572_v9 }
  0x3a   :  { %1966 = vst [vmem:[#allocation21_spill] sm:$0xff] %v1572_v9  ;;  %v1592_v60 = vrot.slane %v1580_v36, %v1105_v14  ;;  %v1595_v39 = vrot.slane %v516_v57, %v1103_v13  ;;  %v768_v42 = vcombine.high %v766_v19, %v766_v19  ;;  %v398_v63 = vmul.f32 %v1172_v37, %v1588_v8 }
  0x3b   :  { %v957_v23 = vsub.f32 %v901_v11, %v949_v40  ;;  %v218_v4 = vsub.f32 %v162_v32, %v210_v15  ;;  %v1600_v9 = vrot.slane %v568_v12, %v1103_v13  ;;  %v820_v20 = vcombine.high %v818_v55, %v818_v55 }
  0x3c   :  { %v446_v27 = vmul.f32 %v1177_v38, %v1592_v60  ;;  %v1606_v11 = vrot.slane %v1595_v39, %v1105_v14  ;;  %v1609_v40 = vrot.slane %v768_v42, %v1103_v13  ;;  %v111_v55 = vcombine.high %v1475_v43, %v1475_v43 }
  0x3d   :  { %v965_v18 = vadd.f32 %v957_v23, %v713_v29  ;;  %v1613_v19 = vrot.slane %v1600_v9, %v1105_v14  ;;  %v1616_v57 = vrot.slane %v820_v20, %v1103_v13  ;;  %v59_v23 = vcombine.high %v1466_v31, %v1466_v31 }
  0x3e   :  { %v454_v29 = vsub.f32 %v398_v63, %v446_v27  ;;  %v650_v32 = vmul.f32 %v1188_v41, %v1606_v11  ;;  %v1629_v15 = vrot.slane %v1609_v40, %v1105_v14  ;;  %v294_v13 = vcombine.high %v1478_v6, %v1478_v6 }
  0x3f   :  { %1967 = vst [vmem:[#allocation22_spill] sm:$0xff] %v1613_v19  ;;  %1005 = vst [vmem:[%s1912_s2 + $0x20] sm:$0xff] %v965_v18  ;;  %v698_v31 = vmul.f32 %v1216_v48, %v1613_v19  ;;  %v1637_v43 = vrot.slane %v1616_v57, %v1105_v14  ;;  %v1640_v18 = vrot.slane %v59_v23, %v1105_v14 }
  0x40   :  { %1968 = vst [vmem:[#allocation23_spill] sm:$0xff] %v1629_v15  ;;  %v1643_v63 = vrot.slane %v111_v55, %v1105_v14  ;;  %v462_v20 = vadd.f32 %v454_v29, %v218_v4  ;;  %v902_v12 = vmul.f32 %v1221_v49, %v1629_v15  ;;  %v346_v6 = vcombine.high %v1485_v0, %v1485_v0 }
  0x41   :  { %1969 = vst [vmem:[#allocation24_spill] sm:$0xff] %v1637_v43  ;;  %1970 = vst [vmem:[#allocation25_spill] sm:$0xff] %v1640_v18  ;;  %v1650_v42 = vrot.slane %v294_v13, %v1105_v14  ;;  %v706_v27 = vsub.f32 %v650_v32, %v698_v31  ;;  %v950_v19 = vmul.f32 %v1226_v50, %v1637_v43 }
  0x42   :  { %1971 = vst [vmem:[#allocation26_spill] sm:$0xff] %v1643_v63  ;;  %v163_v23 = vmul.f32 %v1640_v18, %v1156_v33  ;;  %v211_v55 = vmul.f32 %v1161_v34, %v1643_v63  ;;  %v1661_v29 = vrot.slane %v346_v6, %v1105_v14  ;;  %v546_v0 = vcombine.high %v1510_v10, %v1510_v10 }
  0x43   :  { %1972 = vst [vmem:[#allocation27_spill] sm:$0xff] %v1650_v42  ;;  %v399_v4 = vmul.f32 %v1172_v37, %v1650_v42  ;;  %v598_v32 = vcombine.high %v1513_v1, %v1513_v1  ;;  %v714_v13 = vadd.f32 %v706_v27, %v462_v20  ;;  %v958_v31 = vsub.f32 %v902_v12, %v950_v19 }
  0x44   :  { %v219_v43 = vsub.f32 %v163_v23, %v211_v55  ;;  %v798_v18 = vcombine.high %v1541_v7, %v1541_v7  ;;  %v447_v63 = vmul.f32 %v1177_v38, %v1661_v29  ;;  %v1672_v42 = vrot.slane %v546_v0, %v1105_v14 }
  0x45   :  { %v1675_v6 = vrot.slane %v598_v32, %v1105_v14  ;;  %v850_v10 = vcombine.high %v1548_v16, %v1548_v16  ;;  %v966_v15 = vadd.f32 %v958_v31, %v714_v13  ;;  %v61_v19 = vcombine.high %v1555_v30, %v1555_v30 }
  0x46   :  { %v1680_v1 = vrot.slane %v798_v18, %v1105_v14  ;;  %v113_v7 = vcombine.high %v1558_v5, %v1558_v5  ;;  %v455_v20 = vsub.f32 %v399_v4, %v447_v63  ;;  %v651_v12 = vmul.f32 %v1188_v41, %v1672_v42 }
  0x47   :  { %v699_v27 = vmul.f32 %v1216_v48, %v1675_v6  ;;  %v1691_v23 = vrot.slane %v850_v10, %v1105_v14  ;;  %1006 = vst [vmem:[%s1912_s2 + $0x28] sm:$0xff] %v966_v15  ;;  %v1699_v30 = vrot.slane %v61_v19, %v1105_v14  ;;  %v296_v18 = vcombine.high %v1575_v62, %v1575_v62 }
  0x48   :  { %v903_v16 = vmul.f32 %v1221_v49, %v1680_v1  ;;  %v1702_v5 = vrot.slane %v113_v7, %v1105_v14  ;;  %v463_v63 = vadd.f32 %v455_v20, %v219_v43  ;;  %v348_v15 = vcombine.high %v1580_v36, %v1580_v36 }
  0x49   :  { %v707_v55 = vsub.f32 %v651_v12, %v699_v27  ;;  %v951_v4 = vmul.f32 %v1226_v50, %v1691_v23  ;;  %v164_v0 = vmul.f32 %v1699_v30, %v1156_v33  ;;  %v1715_v13 = vrot.slane %v296_v18, %v1105_v14 }
  0x4a   :  { %v212_v32 = vmul.f32 %v1161_v34, %v1702_v5  ;;  %v548_v62 = vcombine.high %v1595_v39, %v1595_v39  ;;  %v1720_v10 = vrot.slane %v348_v15, %v1105_v14  ;;  %v600_v36 = vcombine.high %v1600_v9, %v1600_v9 }
  0x4b   :  { %v715_v43 = vadd.f32 %v707_v55, %v463_v63  ;;  %v959_v31 = vsub.f32 %v903_v16, %v951_v4  ;;  %v400_v7 = vmul.f32 %v1172_v37, %v1715_v13  ;;  %v800_v12 = vcombine.high %v1609_v40, %v1609_v40 }
  0x4c   :  { %v220_v19 = vsub.f32 %v164_v0, %v212_v32  ;;  %v1727_v20 = vrot.slane %v548_v62, %v1105_v14  ;;  %v448_v39 = vmul.f32 %v1177_v38, %v1720_v10  ;;  %v1734_v16 = vrot.slane %v600_v36, %v1105_v14 }
  0x4d   :  { %v967_v27 = vadd.f32 %v959_v31, %v715_v43  ;;  %v852_v9 = vcombine.high %v1616_v57, %v1616_v57  ;;  %v1741_v63 = vrot.slane %v800_v12, %v1105_v14  ;;  %v221_v55 = vmul.f32 %v1161_v34, %v1199_v44 }
  0x4e   :  { %v652_v18 = vmul.f32 %v1188_v41, %v1727_v20  ;;  %v229_v40 = vmul.f32 %v1203_v45, %v1156_v33  ;;  %v456_v4 = vsub.f32 %v400_v7, %v448_v39  ;;  %v700_v57 = vmul.f32 %v1216_v48, %v1734_v16 }
  0x4f   :  { %1007 = vst [vmem:[%s1912_s2 + $0x30] sm:$0xff] %v967_v27  ;;  %v1753_v15 = vrot.slane %v852_v9, %v1105_v14  ;;  %v465_v0 = vmul.f32 %v1177_v38, %v1207_v46  ;;  %v904_v44 = vmul.f32 %v1221_v49, %v1741_v63  ;;  %v473_v45 = vmul.f32 %v1172_v37, %v1211_v47 }
  0x50   :  { %v237_v32 = vadd.f32 %v229_v40, %v221_v55  ;;  %v717_v62 = vmul.f32 %v1216_v48, %v1230_v51  ;;  %v464_v43 = vadd.f32 %v456_v4, %v220_v19  ;;  %v708_v31 = vsub.f32 %v652_v18, %v700_v57 }
  0x51   :  { %v952_v36 = vmul.f32 %v1226_v50, %v1753_v15  ;;  %v725_v14 = vmul.f32 %v1188_v41, %v1234_v52  ;;  %v481_v7 = vadd.f32 %v473_v45, %v465_v0  ;;  %v969_v46 = vmul.f32 %v1226_v50, %v1238_v53 }
  0x52   :  { %v977_v12 = vmul.f32 %v1221_v49, %v1242_v54  ;;  %v222_v47 = vmul.f32 %v1161_v34, %v1274_v25  ;;  %v716_v27 = vadd.f32 %v708_v31, %v464_v43  ;;  %v230_v39 = vmul.f32 %v1278_v26, %v1156_v33  ;;  %v1975_v43 = vld [vmem:[#allocation4_spill] sm:$0xff] }
  0x53   :  { %v960_v51 = vsub.f32 %v904_v44, %v952_v36  ;;  %v733_v19 = vadd.f32 %v725_v14, %v717_v62  ;;  %v489_v9 = vadd.f32 %v481_v7, %v237_v32  ;;  %v466_v52 = vmul.f32 %v1177_v38, %v1285_v22 }
  0x54   :  { %v985_v18 = vadd.f32 %v977_v12, %v969_v46  ;;  %v474_v53 = vmul.f32 %v1172_v37, %v1289_v21  ;;  %v238_v40 = vadd.f32 %v230_v39, %v222_v47  ;;  %v718_v54 = vmul.f32 %v1216_v48, %v1303_v58  ;;  %v1973_v58 = vld [vmem:[#allocation2_spill] sm:$0xff] }
  0x55   :  { %v968_v55 = vadd.f32 %v960_v51, %v716_v27  ;;  %v726_v25 = vmul.f32 %v1188_v41, %v1311_v61  ;;  %v741_v4 = vadd.f32 %v733_v19, %v489_v9  ;;  %v970_v26 = vmul.f32 %v1226_v50, %v1322_v2  ;;  %v1974_v61 = vld [vmem:[#allocation3_spill] sm:$0xff] }
  0x56   :  { %v482_v57 = vadd.f32 %v474_v53, %v466_v52  ;;  %v978_v0 = vmul.f32 %v1221_v49, %v1344_v59  ;;  %v223_v21 = vmul.f32 %v1161_v34, %v1336_v56  ;;  %v231_v44 = vmul.f32 %v1973_v58, %v1156_v33  ;;  %v1979_v53 = vld [vmem:[#allocation8_spill] sm:$0xff]  ;;  %v1984_v58 = vld [vmem:[#allocation13_spill] sm:$0xff] }
  0x57   :  { %1008 = vst [vmem:[%s1912_s2 + $0x38] sm:$0xff] %v968_v55  ;;  %v734_v22 = vadd.f32 %v726_v25, %v718_v54  ;;  %v467_v32 = vmul.f32 %v1177_v38, %v1974_v61  ;;  %v993_v45 = vadd.f32 %v985_v18, %v741_v4  ;;  %v475_v59 = vmul.f32 %v1172_v37, %v1975_v43  ;;  %v1980_v54 = vld [vmem:[#allocation9_spill] sm:$0xff]  ;;  %v1981_v25 = vld [vmem:[#allocation10_spill] sm:$0xff] }
  0x58   :  { %v490_v62 = vadd.f32 %v482_v57, %v238_v40  ;;  %v986_v2 = vadd.f32 %v978_v0, %v970_v26  ;;  %v239_v31 = vadd.f32 %v231_v44, %v223_v21  ;;  %v719_v36 = vmul.f32 %v1216_v48, %v1370_v28  ;;  %v1976_v28 = vld [vmem:[#allocation5_spill] sm:$0xff]  ;;  %v1982_v26 = vld [vmem:[#allocation11_spill] sm:$0xff] }
  0x59   :  { %v727_v14 = vmul.f32 %v1188_v41, %v1375_v17  ;;  %v971_v56 = vmul.f32 %v1226_v50, %v1382_v35  ;;  %1036 = vst [vmem:[%s1912_s2 + $0x40] sm:$0xff] %v993_v45  ;;  %v483_v46 = vadd.f32 %v475_v59, %v467_v32  ;;  %v979_v12 = vmul.f32 %v1221_v49, %v1389_v24  ;;  %v1977_v17 = vld [vmem:[#allocation6_spill] sm:$0xff]  ;;  %v1978_v35 = vld [vmem:[#allocation7_spill] sm:$0xff] }
  0x5a   :  { %v742_v7 = vadd.f32 %v734_v22, %v490_v62  ;;  %v224_v47 = vmul.f32 %v1161_v34, %v1396_v3  ;;  %v232_v51 = vmul.f32 %v1976_v28, %v1156_v33  ;;  %v468_v19 = vmul.f32 %v1177_v38, %v1977_v17  ;;  %v1983_v22 = vld [vmem:[#allocation12_spill] sm:$0xff]  ;;  %v1985_v45 = vld [vmem:[#allocation14_spill] sm:$0xff] }
  0x5b   :  { %v735_v27 = vadd.f32 %v727_v14, %v719_v36  ;;  %v476_v39 = vmul.f32 %v1172_v37, %v1978_v35  ;;  %v491_v18 = vadd.f32 %v483_v46, %v239_v31  ;;  %v987_v52 = vadd.f32 %v979_v12, %v971_v56  ;;  %v1987_v14 = vld [vmem:[#allocation16_spill] sm:$0xff]  ;;  %v1988_v12 = vld [vmem:[#allocation17_spill] sm:$0xff] }
  0x5c   :  { %v994_v9 = vadd.f32 %v986_v2, %v742_v7  ;;  %v720_v55 = vmul.f32 %v1216_v48, %v1979_v53  ;;  %v240_v24 = vadd.f32 %v232_v51, %v224_v47  ;;  %v728_v3 = vmul.f32 %v1188_v41, %v1980_v54  ;;  %v1986_v2 = vld [vmem:[#allocation15_spill] sm:$0xff] }
  0x5d   :  { %v484_v40 = vadd.f32 %v476_v39, %v468_v19  ;;  %v972_v4 = vmul.f32 %v1226_v50, %v1981_v25  ;;  %v743_v57 = vadd.f32 %v735_v27, %v491_v18  ;;  %v980_v0 = vmul.f32 %v1221_v49, %v1982_v26  ;;  %v1989_v27 = vld [vmem:[#allocation18_spill] sm:$0xff]  ;;  %v1990_v51 = vld [vmem:[#allocation19_spill] sm:$0xff]  ;;  %v1991_v19 = vld [vmem:[#allocation20_spill] sm:$0xff] }
  0x5e   :  { %1037 = vst [vmem:[%s1912_s2 + $0x48] sm:$0xff] %v994_v9  ;;  %v225_v21 = vmul.f32 %v1161_v34, %v1983_v22  ;;  %v233_v44 = vmul.f32 %v1984_v58, %v1156_v33  ;;  %v736_v32 = vadd.f32 %v728_v3, %v720_v55  ;;  %v469_v62 = vmul.f32 %v1177_v38, %v1985_v45  ;;  %v1992_v39 = vld [vmem:[#allocation21_spill] sm:$0xff]  ;;  %v1993_v25 = vld [vmem:[#allocation22_spill] sm:$0xff]  ;;  %v1994_v26 = vld [vmem:[#allocation23_spill] sm:$0xff] }
  0x5f   :  { %v492_v61 = vadd.f32 %v484_v40, %v240_v24  ;;  %v477_v43 = vmul.f32 %v1172_v37, %v1986_v2  ;;  %v995_v59 = vadd.f32 %v987_v52, %v743_v57  ;;  %v988_v31 = vadd.f32 %v980_v0, %v972_v4  ;;  %v1995_v22 = vld [vmem:[#allocation24_spill] sm:$0xff]  ;;  %v1996_v58 = vld [vmem:[#allocation25_spill] sm:$0xff] }
  0x60   :  { %v241_v36 = vadd.f32 %v233_v44, %v225_v21  ;;  %v721_v56 = vmul.f32 %v1216_v48, %v1987_v14  ;;  %v729_v47 = vmul.f32 %v1188_v41, %v1988_v12  ;;  %v973_v28 = vmul.f32 %v1226_v50, %v1989_v27 }
  0x61   :  { %v744_v7 = vadd.f32 %v736_v32, %v492_v61  ;;  %v485_v46 = vadd.f32 %v477_v43, %v469_v62  ;;  %1038 = vst [vmem:[%s1912_s2 + $0x50] sm:$0xff] %v995_v59  ;;  %v981_v17 = vmul.f32 %v1221_v49, %v1990_v51  ;;  %v226_v35 = vmul.f32 %v1161_v34, %v1991_v19  ;;  %v1998_v32 = vld [vmem:[#allocation27_spill] sm:$0xff] }
  0x62   :  { %v234_v9 = vmul.f32 %v1992_v39, %v1156_v33  ;;  %v470_v18 = vmul.f32 %v1177_v38, %v1588_v8  ;;  %v737_v55 = vadd.f32 %v729_v47, %v721_v56  ;;  %v478_v24 = vmul.f32 %v1172_v37, %v1592_v60 }
  0x63   :  { %v996_v52 = vadd.f32 %v988_v31, %v744_v7  ;;  %v493_v53 = vadd.f32 %v485_v46, %v241_v36  ;;  %v989_v40 = vadd.f32 %v981_v17, %v973_v28  ;;  %v722_v3 = vmul.f32 %v1216_v48, %v1606_v11  ;;  %v1997_v11 = vld [vmem:[#allocation26_spill] sm:$0xff] }
  0x64   :  { %v242_v54 = vadd.f32 %v234_v9, %v226_v35  ;;  %v730_v4 = vmul.f32 %v1188_v41, %v1993_v25  ;;  %v486_v8 = vadd.f32 %v478_v24, %v470_v18  ;;  %v974_v0 = vmul.f32 %v1226_v50, %v1994_v26 }
  0x65   :  { %1039 = vst [vmem:[%s1912_s2 + $0x58] sm:$0xff] %v996_v52  ;;  %v745_v57 = vadd.f32 %v737_v55, %v493_v53  ;;  %v982_v60 = vmul.f32 %v1221_v49, %v1995_v22  ;;  %v227_v44 = vmul.f32 %v1161_v34, %v1996_v58  ;;  %v235_v61 = vmul.f32 %v1997_v11, %v1156_v33 }
  0x66   :  { %v738_v21 = vadd.f32 %v730_v4, %v722_v3  ;;  %v471_v45 = vmul.f32 %v1177_v38, %v1998_v32  ;;  %v494_v2 = vadd.f32 %v486_v8, %v242_v54  ;;  %v479_v59 = vmul.f32 %v1172_v37, %v1661_v29 }
  0x67   :  { %v997_v62 = vadd.f32 %v989_v40, %v745_v57  ;;  %v990_v43 = vadd.f32 %v982_v60, %v974_v0  ;;  %v243_v31 = vadd.f32 %v235_v61, %v227_v44  ;;  %v723_v36 = vmul.f32 %v1216_v48, %v1672_v42 }
  0x68   :  { %v731_v14 = vmul.f32 %v1188_v41, %v1675_v6  ;;  %v975_v56 = vmul.f32 %v1226_v50, %v1680_v1  ;;  %v746_v7 = vadd.f32 %v738_v21, %v494_v2  ;;  %v487_v46 = vadd.f32 %v479_v59, %v471_v45 }
  0x69   :  { %1040 = vst [vmem:[%s1912_s2 + $0x60] sm:$0xff] %v997_v62  ;;  %v983_v12 = vmul.f32 %v1221_v49, %v1691_v23  ;;  %v228_v29 = vmul.f32 %v1161_v34, %v1699_v30  ;;  %v236_v42 = vmul.f32 %v1702_v5, %v1156_v33  ;;  %v472_v6 = vmul.f32 %v1177_v38, %v1715_v13 }
  0x6a   :  { %v739_v47 = vadd.f32 %v731_v14, %v723_v36  ;;  %v480_v1 = vmul.f32 %v1172_v37, %v1720_v10  ;;  %v998_v27 = vadd.f32 %v990_v43, %v746_v7  ;;  %v495_v28 = vadd.f32 %v487_v46, %v243_v31 }
  0x6b   :  { %v991_v51 = vadd.f32 %v983_v12, %v975_v56  ;;  %v724_v17 = vmul.f32 %v1216_v48, %v1727_v20  ;;  %v244_v23 = vadd.f32 %v236_v42, %v228_v29  ;;  %v732_v34 = vmul.f32 %v1188_v41, %v1734_v16 }
  0x6c   :  { %v488_v19 = vadd.f32 %v480_v1, %v472_v6  ;;  %v976_v33 = vmul.f32 %v1226_v50, %v1741_v63  ;;  %1041 = vst [vmem:[%s1912_s2 + $0x68] sm:$0xff] %v998_v27  ;;  %v747_v38 = vadd.f32 %v739_v47, %v495_v28  ;;  %v984_v37 = vmul.f32 %v1221_v49, %v1753_v15 }
  0x6d   :  { %v740_v5 = vadd.f32 %v732_v34, %v724_v17 }
  0x6e   :  { %v496_v30 = vadd.f32 %v488_v19, %v244_v23  ;;  %v999_v13 = vadd.f32 %v991_v51, %v747_v38  ;;  %v992_v48 = vadd.f32 %v984_v37, %v976_v33 }
  0x70   :  { %v748_v10 = vadd.f32 %v740_v5, %v496_v30  ;;  %1042 = vst [vmem:[%s1912_s2 + $0x70] sm:$0xff] %v999_v13 }
  0x72   :  { %v1000_v41 = vadd.f32 %v992_v48, %v748_v10 }
  0x74   :  { %1043 = vst [vmem:[%s1912_s2 + $0x78] sm:$0xff] %v1000_v41 }

</bundles_post_ra>
